<compile_context>
chip_gen: v5e
topology: v5e:2x2
jax: 0.10.0
libtpu: 0.0.40
codegen_flags: <defaults>
</compile_context>

<pallas_src>
import jax
import jax.numpy as jnp
from jax.experimental import pallas as pl
from jax.experimental.pallas import tpu as pltpu


# ----------------------------------------------------------------------------
# Pallas kernel: one grid step = one (batch, map-row).  The whole tile bank of
# batch b sits in VMEM; for every map cell j we read its tile index from the
# scalar-prefetched wang map in SMEM, dynamically slice that tile out of the
# bank and write it into its column slot of the NCHW output row block.
# ----------------------------------------------------------------------------
def _make_row_kernel(mh, mw, tw):
    def kernel(tmap_ref, bank_ref, out_ref):
        # tmap_ref: SMEM (B*mh*mw,) int32   -- scalar prefetch (flat wang map)
        # bank_ref: VMEM (K, C, th, tw)     -- full tile bank of batch b
        # out_ref : VMEM (C, th, mw*tw)     -- one output map row (NCHW slice)
        b = pl.program_id(0)
        i = pl.program_id(1)
        base = (b * mh + i) * mw
        # Static Python loop: mw is known at trace time, offsets stay static
        # (dynamic lane-offset stores are avoided; only the bank gather index
        # is dynamic, and it sits on the untiled leading axis).
        for j in range(mw):
            k = tmap_ref[base + j]                       # tile id for cell (i, j)
            out_ref[:, :, pl.ds(j * tw, tw)] = bank_ref[k]
    return kernel


def render_wang_map_pallas(bank, tile_map):
    """bank: (B, K, C, th, tw) tile bank; tile_map: (B, mh, mw) int32 indices.

    Returns the rendered image directly in NCHW: (B, C, mh*th, mw*tw).
    """
    B, K, C, th, tw = bank.shape
    _, mh, mw = tile_map.shape
    # Sublane constraint of the NCHW output block: th must divide into 8-rows
    # (or be the full output height).  Real wang tiles easily satisfy this.
    assert th % 8 == 0 or mh == 1, "tile height must be a multiple of 8"

    tmap_flat = tile_map.reshape(-1).astype(jnp.int32)   # 1-D SMEM prefetch

    in_spec = pl.BlockSpec(
        (None, K, C, th, tw), lambda b, i, tmap: (b, 0, 0, 0, 0)
    )
    out_spec = pl.BlockSpec(
        (None, C, th, mw * tw), lambda b, i, tmap: (b, 0, i, 0)
    )

    # VMEM budget: double-buffered bank + double-buffered output row, with the
    # (8, 128) tile padding the last two dims get in VMEM.  Capped at 64 MiB so
    # the same setting is valid on v7x.
    esize = jnp.dtype(bank.dtype).itemsize
    pad_th = pl.cdiv(th, 8) * 8
    bank_vmem = 2 * K * C * pad_th * (pl.cdiv(tw, 128) * 128) * esize
    row_vmem = 2 * C * pad_th * (pl.cdiv(mw * tw, 128) * 128) * esize
    vmem_limit = int(min(max(bank_vmem + row_vmem + (4 << 20), 32 << 20), 64 << 20))

    fn = pl.pallas_call(
        _make_row_kernel(mh, mw, tw),
        out_shape=jax.ShapeDtypeStruct((B, C, mh * th, mw * tw), bank.dtype),
        grid_spec=pltpu.PrefetchScalarGridSpec(
            num_scalar_prefetch=1,
            grid=(B, mh),
            in_specs=[in_spec],
            out_specs=out_spec,
        ),
        compiler_params=pltpu.CompilerParams(
            dimension_semantics=("parallel", "parallel"),
            vmem_limit_bytes=vmem_limit,
        ),
    )
    return fn(tmap_flat, bank)


# ----------------------------------------------------------------------------
# Plain-JAX glue reproducing the wang-tile bookkeeping.
# ----------------------------------------------------------------------------
def wang_map_stochastic_scanline(key, batch, map_size, num_colors):
    """Random wang map where adjacent tiles share edge colors (edge mode).

    Tile with edge colors (n, e, s, w) lives in the template grid at
    row = n * num_colors + s, col = w * num_colors + e; returned index is
    row * G + col with G = num_colors**2.
    """
    mh, mw = map_size
    k1, k2 = jax.random.split(key)
    # S[:, i, :] is the south edge of row i-1 == north edge of row i.
    S = jax.random.randint(k1, (batch, mh + 1, mw), 0, num_colors, jnp.int32)
    # E[:, :, j] is the east edge of col j-1 == west edge of col j.
    E = jax.random.randint(k2, (batch, mh, mw + 1), 0, num_colors, jnp.int32)
    n, s = S[:, :-1, :], S[:, 1:, :]
    w, e = E[:, :, :-1], E[:, :, 1:]
    G = num_colors * num_colors
    row = n * num_colors + s
    col = w * num_colors + e
    return row * G + col  # (B, mh, mw) int32


def random_wang_map(x, key, map_size, num_colors=2, mode="edge", overlap=0,
                    probability=1.0):
    """JAX/Pallas equivalent of RandomWangMap.forward."""
    if mode != "edge":
        raise NotImplementedError("only mode='edge' is implemented")
    if overlap not in (0, (0, 0)):
        # TODO(synk): nonzero overlap requires blended overlapping tile writes.
        raise NotImplementedError("only overlap=0 is implemented")
    if probability < 1.0:
        # TODO(synk): host-side random.random() gating (return template as-is)
        # has no deterministic in-kernel equivalent; default probability=1.0.
        raise NotImplementedError("only probability=1.0 is implemented")

    squeeze = False
    if x.ndim == 3:
        x = x[None]
        squeeze = True
    elif x.ndim != 4:
        raise ValueError(f"Expected 3 or 4 dims, got {x.shape}")

    B, C, H, W = x.shape
    G = num_colors ** 2                      # template tile grid is G x G
    assert H % G == 0 and W % G == 0, "template must hold a GxG tile grid"
    th, tw = H // G, W // G
    mh, mw = map_size

    # Template image -> tile bank (B, K, C, th, tw), K = G*G tiles.  This is a
    # single cheap pass over the (small) template; it lets the in-kernel gather
    # be a dynamic index on the untiled leading bank axis instead of a dynamic
    # lane/sublane slice into the raw NCHW template.
    tiles = (
        x.reshape(B, C, G, th, G, tw)
         .transpose(0, 2, 4, 1, 3, 5)
         .reshape(B, G * G, C, th, tw)
    )

    # One independent random map per batch element (matches per-item _render).
    tile_map = wang_map_stochastic_scanline(key, B, map_size, num_colors)

    # Hot path: gather + assemble in the Pallas kernel, output already in NCHW.
    out = render_wang_map_pallas(tiles, tile_map)   # (B, C, mh*th, mw*tw)

    return (out[0] if squeeze else out), tile_map, tiles


if __name__ == "__main__":
    key = jax.random.PRNGKey(0)
    kx, kmap = jax.random.split(key)

    # Small NCHW template: B=2, C=4, 4x4 tile grid of 8x8 tiles -> 32x32.
    B, C, num_colors = 2, 4, 2
    G = num_colors ** 2
    th = tw = 8
    x = jax.random.normal(kx, (B, C, G * th, G * tw), dtype=jnp.float32)

    map_size = (3, 5)
    out, tile_map, tiles = random_wang_map(x, kmap, map_size,
                                           num_colors=num_colors)
    out = jax.block_until_ready(out)

    # Shape / dtype checks.
    assert out.shape == (B, C, map_size[0] * th, map_size[1] * tw), out.shape
    assert out.dtype == x.dtype

    # Pure-JAX reference of the gather + assembly, to validate the kernel.
    ref_tiles = tiles[jnp.arange(B)[:, None, None], tile_map]   # (B,mh,mw,C,th,tw)
    ref = (
        ref_tiles.transpose(0, 3, 1, 4, 2, 5)
                 .reshape(B, C, map_size[0] * th, map_size[1] * tw)
    )
    assert jnp.array_equal(out, ref), "Pallas render mismatch vs reference"

    # Wang-map consistency: neighbouring tiles share edge colors.
    n = tile_map // (num_colors * G)
    s = (tile_map // G) % num_colors
    w = (tile_map % G) // num_colors
    e = tile_map % num_colors
    assert jnp.array_equal(s[:, :-1, :], n[:, 1:, :])
    assert jnp.array_equal(e[:, :, :-1], w[:, :, 1:])

    print("KERNEL_OK")
</pallas_src>

<mosaic_0001>
module attributes {stable_mosaic.version = 11 : i64} {
  func.func @kernel(%arg0: i32, %arg1: i32, %arg2: memref<30xi32, #tpu.memory_space<smem>>, %arg3: memref<1x16x4x8x8xf32, #tpu.memory_space<vmem>>, %arg4: memref<1x4x8x40xf32, #tpu.memory_space<vmem>>) attributes {dimension_semantics = [#tpu.dimension_semantics<parallel>, #tpu.dimension_semantics<parallel>], iteration_bounds = array<i64: 2, 3>, scalar_prefetch = 1 : i64, scratch_operands = 0 : i64, tpu.core_type = #tpu.core_type<tc>, window_params = [{transform_indices = @transform_0, window_bounds = array<i64: 1, 16, 4, 8, 8>}, {transform_indices = @transform_1, window_bounds = array<i64: 1, 4, 8, 40>}]} {
    %c3_i32 = arith.constant 3 : i32
    %0 = arith.muli %arg0, %c3_i32 : i32
    %1 = arith.addi %0, %arg1 : i32
    %c5_i32 = arith.constant 5 : i32
    %2 = arith.muli %1, %c5_i32 : i32
    %c0_i32 = arith.constant 0 : i32
    %3 = arith.addi %2, %c0_i32 : i32
    %4 = arith.index_cast %3 : i32 to index
    %5 = memref.load %arg2[%4] : memref<30xi32, #tpu.memory_space<smem>>
    %c0 = arith.constant 0 : index
    %6 = arith.index_cast %5 : i32 to index
    %c0_0 = arith.constant 0 : index
    %c0_1 = arith.constant 0 : index
    %c0_2 = arith.constant 0 : index
    %7 = vector.load %arg3[%c0, %6, %c0_0, %c0_1, %c0_2] : memref<1x16x4x8x8xf32, #tpu.memory_space<vmem>>, vector<1x1x4x8x8xf32>
    %8 = vector.shape_cast %7 : vector<1x1x4x8x8xf32> to vector<4x8x8xf32>
    %c0_3 = arith.constant 0 : index
    %c0_4 = arith.constant 0 : index
    %c0_5 = arith.constant 0 : index
    %c0_6 = arith.constant 0 : index
    %9 = vector.load %arg4[%c0_3, %c0_4, %c0_5, %c0_6] : memref<1x4x8x40xf32, #tpu.memory_space<vmem>>, vector<1x4x8x8xf32>
    %10 = vector.shape_cast %9 : vector<1x4x8x8xf32> to vector<4x8x8xf32>
    %11 = vector.shape_cast %8 : vector<4x8x8xf32> to vector<1x4x8x8xf32>
    tpu.vector_store %arg4[%c0_3, %c0_4, %c0_5, %c0_6], %11 {strides = array<i32>} : memref<1x4x8x40xf32, #tpu.memory_space<vmem>>, vector<1x4x8x8xf32>,
    %c1_i32 = arith.constant 1 : i32
    %12 = arith.addi %2, %c1_i32 : i32
    %13 = arith.index_cast %12 : i32 to index
    %14 = memref.load %arg2[%13] : memref<30xi32, #tpu.memory_space<smem>>
    %c0_7 = arith.constant 0 : index
    %15 = arith.index_cast %14 : i32 to index
    %c0_8 = arith.constant 0 : index
    %c0_9 = arith.constant 0 : index
    %c0_10 = arith.constant 0 : index
    %16 = vector.load %arg3[%c0_7, %15, %c0_8, %c0_9, %c0_10] : memref<1x16x4x8x8xf32, #tpu.memory_space<vmem>>, vector<1x1x4x8x8xf32>
    %17 = vector.shape_cast %16 : vector<1x1x4x8x8xf32> to vector<4x8x8xf32>
    %c0_11 = arith.constant 0 : index
    %c0_12 = arith.constant 0 : index
    %c0_13 = arith.constant 0 : index
    %c8 = arith.constant 8 : index
    %18 = vector.load %arg4[%c0_11, %c0_12, %c0_13, %c8] : memref<1x4x8x40xf32, #tpu.memory_space<vmem>>, vector<1x4x8x8xf32>
    %19 = vector.shape_cast %18 : vector<1x4x8x8xf32> to vector<4x8x8xf32>
    %20 = vector.shape_cast %17 : vector<4x8x8xf32> to vector<1x4x8x8xf32>
    tpu.vector_store %arg4[%c0_11, %c0_12, %c0_13, %c8], %20 {strides = array<i32>} : memref<1x4x8x40xf32, #tpu.memory_space<vmem>>, vector<1x4x8x8xf32>,
    %c2_i32 = arith.constant 2 : i32
    %21 = arith.addi %2, %c2_i32 : i32
    %22 = arith.index_cast %21 : i32 to index
    %23 = memref.load %arg2[%22] : memref<30xi32, #tpu.memory_space<smem>>
    %c0_14 = arith.constant 0 : index
    %24 = arith.index_cast %23 : i32 to index
    %c0_15 = arith.constant 0 : index
    %c0_16 = arith.constant 0 : index
    %c0_17 = arith.constant 0 : index
    %25 = vector.load %arg3[%c0_14, %24, %c0_15, %c0_16, %c0_17] : memref<1x16x4x8x8xf32, #tpu.memory_space<vmem>>, vector<1x1x4x8x8xf32>
    %26 = vector.shape_cast %25 : vector<1x1x4x8x8xf32> to vector<4x8x8xf32>
    %c0_18 = arith.constant 0 : index
    %c0_19 = arith.constant 0 : index
    %c0_20 = arith.constant 0 : index
    %c16 = arith.constant 16 : index
    %27 = vector.load %arg4[%c0_18, %c0_19, %c0_20, %c16] : memref<1x4x8x40xf32, #tpu.memory_space<vmem>>, vector<1x4x8x8xf32>
    %28 = vector.shape_cast %27 : vector<1x4x8x8xf32> to vector<4x8x8xf32>
    %29 = vector.shape_cast %26 : vector<4x8x8xf32> to vector<1x4x8x8xf32>
    tpu.vector_store %arg4[%c0_18, %c0_19, %c0_20, %c16], %29 {strides = array<i32>} : memref<1x4x8x40xf32, #tpu.memory_space<vmem>>, vector<1x4x8x8xf32>,
    %c3_i32_21 = arith.constant 3 : i32
    %30 = arith.addi %2, %c3_i32_21 : i32
    %31 = arith.index_cast %30 : i32 to index
    %32 = memref.load %arg2[%31] : memref<30xi32, #tpu.memory_space<smem>>
    %c0_22 = arith.constant 0 : index
    %33 = arith.index_cast %32 : i32 to index
    %c0_23 = arith.constant 0 : index
    %c0_24 = arith.constant 0 : index
    %c0_25 = arith.constant 0 : index
    %34 = vector.load %arg3[%c0_22, %33, %c0_23, %c0_24, %c0_25] : memref<1x16x4x8x8xf32, #tpu.memory_space<vmem>>, vector<1x1x4x8x8xf32>
    %35 = vector.shape_cast %34 : vector<1x1x4x8x8xf32> to vector<4x8x8xf32>
    %c0_26 = arith.constant 0 : index
    %c0_27 = arith.constant 0 : index
    %c0_28 = arith.constant 0 : index
    %c24 = arith.constant 24 : index
    %36 = vector.load %arg4[%c0_26, %c0_27, %c0_28, %c24] : memref<1x4x8x40xf32, #tpu.memory_space<vmem>>, vector<1x4x8x8xf32>
    %37 = vector.shape_cast %36 : vector<1x4x8x8xf32> to vector<4x8x8xf32>
    %38 = vector.shape_cast %35 : vector<4x8x8xf32> to vector<1x4x8x8xf32>
    tpu.vector_store %arg4[%c0_26, %c0_27, %c0_28, %c24], %38 {strides = array<i32>} : memref<1x4x8x40xf32, #tpu.memory_space<vmem>>, vector<1x4x8x8xf32>,
    %c4_i32 = arith.constant 4 : i32
    %39 = arith.addi %2, %c4_i32 : i32
    %40 = arith.index_cast %39 : i32 to index
    %41 = memref.load %arg2[%40] : memref<30xi32, #tpu.memory_space<smem>>
    %c0_29 = arith.constant 0 : index
    %42 = arith.index_cast %41 : i32 to index
    %c0_30 = arith.constant 0 : index
    %c0_31 = arith.constant 0 : index
    %c0_32 = arith.constant 0 : index
    %43 = vector.load %arg3[%c0_29, %42, %c0_30, %c0_31, %c0_32] : memref<1x16x4x8x8xf32, #tpu.memory_space<vmem>>, vector<1x1x4x8x8xf32>
    %44 = vector.shape_cast %43 : vector<1x1x4x8x8xf32> to vector<4x8x8xf32>
    %c0_33 = arith.constant 0 : index
    %c0_34 = arith.constant 0 : index
    %c0_35 = arith.constant 0 : index
    %c32 = arith.constant 32 : index
    %45 = vector.load %arg4[%c0_33, %c0_34, %c0_35, %c32] : memref<1x4x8x40xf32, #tpu.memory_space<vmem>>, vector<1x4x8x8xf32>
    %46 = vector.shape_cast %45 : vector<1x4x8x8xf32> to vector<4x8x8xf32>
    %47 = vector.shape_cast %44 : vector<4x8x8xf32> to vector<1x4x8x8xf32>
    tpu.vector_store %arg4[%c0_33, %c0_34, %c0_35, %c32], %47 {strides = array<i32>} : memref<1x4x8x40xf32, #tpu.memory_space<vmem>>, vector<1x4x8x8xf32>,
    return
  }
  func.func @transform_0(%arg0: i32, %arg1: i32, %arg2: memref<30xi32, #tpu.memory_space<smem>>) -> (i32, i32, i32, i32, i32) {
    %c0_i32 = arith.constant 0 : i32
    %c0_i32_0 = arith.constant 0 : i32
    %c0_i32_1 = arith.constant 0 : i32
    %c0_i32_2 = arith.constant 0 : i32
    %c0_i32_3 = arith.constant 0 : i32
    return %arg0, %c0_i32, %c0_i32_0, %c0_i32_1, %c0_i32_2 : i32, i32, i32, i32, i32
  }
  func.func @transform_1(%arg0: i32, %arg1: i32, %arg2: memref<30xi32, #tpu.memory_space<smem>>) -> (i32, i32, i32, i32) {
    %c0_i32 = arith.constant 0 : i32
    %c0_i32_0 = arith.constant 0 : i32
    %c0_i32_1 = arith.constant 0 : i32
    return %arg0, %c0_i32, %arg1, %c0_i32_0 : i32, i32, i32, i32
  }
}

</mosaic_0001>

<bundles_post_ra>
// kernel: tpu_custom_call.1
= control target key start
LH: loop header
LB: loop body
LE: loop exit
PB: predicated region body
PF: predicated region fallthrough
CT: control target
= control target key end

     0   :  { %s578_s12 = smov [#allocation3]   ;;  %s785_s0 = inlined_call_operand.vmem [shape: s32[30], index: 0, kind: input, shape index: {}]   ;;  %s786_s1 = inlined_call_operand.vmem [shape: f32[2,16,4,8,8], index: 1, kind: input, shape index: {}]   ;;  %s787_s2 = inlined_call_operand.hbm [shape: f32[2,4,24,40], index: 2, kind: output, shape index: {}]  }
   0x1   :  { %s8_s11 = sshll.u32 %s785_s0, 4  ;;  %s9_s11 = int_to_ptr.vmem [resolvable:$true] %s8_s11 }
   0x2   :  { %11 = dma.vmem_to_smem %s9_s11, 16, %s578_s12, [#allocation2] }
   0x3   :  { %540 = dma.done.wait [#allocation2], 16 }
   0x4   :  { %541 = vsyncadd [#allocation2], 4294967280 }
   0x5   :  { %14 = sfence }
   0x6   :  { %15 = vsyncpa [#allocation5], 0 }
   0x7   :  { %17 = vsyncpa [#allocation5 + $0x1], 0  ;;  %s603_s13 = smov 0   ;;  %s605_s14 = smov 0  }
   0x8   :  { %s607_s15 = smov 0   ;;  %s609_s16 = smov 0  }
   0x9   :  { %s611_s17 = smov 0   ;;  %s613_s18 = smov 0  }
   0xa   :  { %s615_s0 = smov 0   ;;  %s617_s19 = smov 0  }
   0xb LB: > { %s371_s20 = sadd.s32 4294967295, %s576_s19   ;;  %s372_s21 = sadd.s32 4294967294, %s576_s19   ;;  %s576_s19 = sphi %s617_s19, %s23_s19   ;;  %s572_s0 = sphi %s615_s0, %s796_s0   ;;  %s568_s18 = sphi %s613_s18, %s795_s18   ;;  %s564_s17 = sphi %s611_s17, %s794_s17   ;;  %s560_s16 = sphi %s609_s16, %s793_s16   ;;  %s556_s15 = sphi %s607_s15, %s792_s15   ;;  %s552_s14 = sphi %s605_s14, %s791_s14   ;;  %s548_s13 = sphi %s603_s13, %s790_s13  }
   0xc   : > { %s32_s22 = sadd.s32 1, %s568_s18  ;;  %s35_s23 = sadd.s32 1, %s572_s0 }
   0xd   : > { %p33_p0 = scmp.ge.s32.totalorder %s32_s22, 3  ;;  %p80_p1 = scmp.ne.s32.totalorder %s556_s15, %s552_s14 }
   0xe   : > { %p81_p2 = scmp.eq.s32.totalorder %s371_s20, 5  ;;  %p86_p5 = scmp.ne.s32.totalorder %s552_s14, %s548_s13 }
   0xf   : > { %s798_s22 = smov (%p33_p0, %s32_s22), 0  ;;  %s800_s23 = smov (!%p33_p0, %s35_s23), %s572_s0 }
  0x10   : > { %s66_s24 = ssub.s32 %s568_s18, %s798_s22  ;;  %p654_p3 = por %p81_p2, %p80_p1 }
  0x11   : > { %p37_p4 = scmp.ge.s32.totalorder %s800_s23, 2  ;;  %p87_p6 = scmp.eq.s32.totalorder %s372_s21, 5 }
  0x12   : > { %p375_p7 = scmp.ge.s32.totalorder %s576_s19, 1  ;;  %p113_p9 = scmp.lt.s32.totalorder %s576_s19, 7 }
  0x13   : > { %s802_s23 = smov (%p37_p4, %s800_s23), 0  ;;  %p663_p8 = por %p87_p6, %p86_p5 }
  0x14   : > { %s65_s27 = ssub.s32 %s572_s0, %s802_s23  ;;  %s70_s28 = sadd.s32 1, %s556_s15 }
  0x15   : > { %s67_s29 = sor.u32 %s66_s24, %s65_s27  ;;  %p114_p10 = pnand %p375_p7, %p113_p9 }
  0x16   : > { %p68_p11 = scmp.eq.s32.totalorder %s67_s29, 0  ;;  %p133_p12 = scmp.lt.s32.totalorder (!%p114_p10), %s564_s17, 1 }
  0x17   : > { %117 = sbr.rel (%p114_p10) target bundleno = 200 (0xc8), region = 24 }
  0x18   : > { %s672_s30 = scalar_select %p68_p11, %s556_s15, %s70_s28  }
  0x19   : > { %s138_s3 = smul.u32 (!%p114_p10), 3, %s564_s17 }
  0x1b   : > { %s139_s5 = sadd.s32 (!%p114_p10), %s560_s16, %s138_s3  ;;  %s579_s3 = smov (!%p114_p10), 8  }
  0x1c   : > { %s134_s4 = scalar_select %p133_p12, %s564_s17, 1  ;;  %vm148_vm0 = vcmask 64512   ;;  %vm177_vm1 = vcmask 130112   ;;  %vm206_vm2 = vcmask 195712   ;;  %vm235_vm3 = vcmask 261312  }
  0x1d   : > { %s678_s6 = smul.u32 5, %s139_s5  ;;  %vm264_vm4 = vcmask 326912  }
  0x1e   : > { %s388_s10 = sshll.u32 %s134_s4, 9 }
  0x1f   : > { %s153_s7 = sadd.s32 1, %s678_s6  ;;  %s182_s8 = sadd.s32 2, %s678_s6 }
  0x20   : > { %s154_s9 = sld [smem:[#allocation3 + %s153_s7]]  ;;  %s685_s21 = scalar_lea.vmem %s786_s1, %s388_s10 }
  0x21   : > { %s183_s11 = sld [smem:[#allocation3 + %s182_s8]]  ;;  %s211_s5 = sadd.s32 3, %s678_s6 }
  0x22   : > { %s141_s24 = sld [smem:[#allocation3 + %s678_s6]]  ;;  %s580_s8 = smov 16  }
  0x23   : > { %s240_s12 = sadd.s32 4, %s678_s6 }
  0x26   : > { %s380_s27 = sshll.u32 %s154_s9, 5  ;;  %s212_s9 = sld [smem:[#allocation3 + %s211_s5]] }
  0x27   : > { %s156_s28 = scalar_lea.vmem %s685_s21, %s380_s27  ;;  %s381_s29 = sshll.u32 %s183_s11, 5 }
  0x28   : > { %v157_v0 = vld [vmem:[%s156_s28] sm:$0xff]  ;;  %v159_v1 = vld [vmem:[%s156_s28 + $0x10] sm:$0xff]  ;;  %s185_s4 = scalar_lea.vmem %s685_s21, %s381_s29  ;;  %s379_s7 = sshll.u32 %s141_s24, 5  ;;  %v158_v3 = vld [vmem:[%s156_s28 + $0x8] sm:$0xff] }
  0x29   : > { %165 = vrot.lane.b32.xlu0 %v157_v0, %s579_s3  ;;  %169 = vrot.lane.b32.xlu1 %v159_v1, %s579_s3  ;;  %v186_v2 = vld [vmem:[%s185_s4] sm:$0xff]  ;;  %s694_s10 = scalar_lea.vmem %s685_s21, %s379_s7  ;;  %v160_v4 = vld [vmem:[%s156_s28 + $0x18] sm:$0xff]  ;;  %s241_s24 = sld [smem:[#allocation3 + %s240_s12]] }
  0x2a   : > { %194 = vrot.lane.b32.xlu2 %v186_v2, %s580_s8  ;;  %v187_v5 = vld [vmem:[%s185_s4 + $0x8] sm:$0xff]  ;;  %v188_v6 = vld [vmem:[%s185_s4 + $0x10] sm:$0xff]  ;;  %v189_v7 = vld [vmem:[%s185_s4 + $0x18] sm:$0xff]  ;;  %s581_s27 = smov 24   ;;  %s582_s29 = smov 32  }
  0x2b   : > { %s130_s4 = sand.u32 1, %s552_s14   ;;  %v144_v16 = vld [vmem:[%s694_s10] sm:$0xff]  ;;  %v146_v17 = vld [vmem:[%s694_s10 + $0x10] sm:$0xff]  ;;  %v145_v18 = vld [vmem:[%s694_s10 + $0x8] sm:$0xff] }
  0x2c   : > { %s382_s11 = sshll.u32 %s212_s9, 5  ;;  %s376_s5 = sshll.u32 %s130_s4, 5  ;;  %v147_v19 = vld [vmem:[%s694_s10 + $0x18] sm:$0xff] }
  0x2d   : > { %s214_s20 = scalar_lea.vmem %s685_s21, %s382_s11  ;;  %s705_s7 = scalar_lea.vmem [#allocation4], %s376_s5 }
  0x2e   : > { %v215_v8 = vld [vmem:[%s214_s20] sm:$0xff]  ;;  %v216_v9 = vld [vmem:[%s214_s20 + $0x8] sm:$0xff]  ;;  %v217_v10 = vld [vmem:[%s214_s20 + $0x10] sm:$0xff]  ;;  %149 = vst.msk [vmem:[%s705_s7] sm:$0xff] %vm148_vm0, %v144_v16  ;;  %s283_s12 = sshll.u32 %s705_s7, 4  ;;  %s284_s12 = int_to_ptr.vmem [resolvable:$true] %s283_s12 }
  0x2f   : > { %s383_s28 = sshll.u32 %s241_s24, 5  ;;  %v218_v11 = vld [vmem:[%s214_s20 + $0x18] sm:$0xff]  ;;  %151 = vst.msk [vmem:[%s705_s7 + $0x10] sm:$0xff] %vm148_vm0, %v146_v17  ;;  %s270_s24 = scalar_lea.sflag [#allocation5], %s130_s4 }
  0x30   : > { %s243_s6 = scalar_lea.vmem %s685_s21, %s383_s28  ;;  %150 = vst.msk [vmem:[%s705_s7 + $0x8] sm:$0xff] %vm148_vm0, %v145_v18  ;;  %s389_s21 = smul.u32 12, %s564_s17 }
  0x31   : > { %167 = vrot.lane.b32.xlu0 %v158_v3, %s579_s3  ;;  %171 = vrot.lane.b32.xlu1 %v160_v4, %s579_s3  ;;  %v244_v12 = vld [vmem:[%s243_s6] sm:$0xff]  ;;  %v245_v13 = vld [vmem:[%s243_s6 + $0x8] sm:$0xff] }
  0x32   : > { %196 = vrot.lane.b32.xlu2 %v187_v5, %s580_s8  ;;  %v246_v14 = vld [vmem:[%s243_s6 + $0x10] sm:$0xff]  ;;  %v247_v15 = vld [vmem:[%s243_s6 + $0x18] sm:$0xff]  ;;  %152 = vst.msk [vmem:[%s705_s7 + $0x18] sm:$0xff] %vm148_vm0, %v147_v19 }
  0x39   : > { %198 = vrot.lane.b32.xlu0 %v188_v6, %s580_s8  ;;  %200 = vrot.lane.b32.xlu1 %v189_v7, %s580_s8  ;;  %s280_s8 = sadd.s32 %s560_s16, %s389_s21 }
  0x3a   : > { %223 = vrot.lane.b32.xlu2 %v215_v8, %s581_s27  ;;  %s385_s10 = sshll.u32 %s280_s8, 3 }
  0x3b   : > { %s282_s17 = scalar_lea.hbm %s787_s2, %s385_s10 }
  0x3c   : > { %s285_s20 = sshll.u32 %s282_s17, 4  ;;  %s286_s20 = int_to_ptr.hbm [resolvable:$true] %s285_s20 }
  0x3d   : > { %s494_s16 = sshra.s32 %s286_s20, 4  ;;  %s495_s16 = int_to_ptr.hbm [resolvable:$true] %s494_s16 }
  0x3e   : > { %p501_p2 = scmp.lt.s32.totalorder %s495_s16, %s787_s2 }
  0x41   : > { %225 = vrot.lane.b32.xlu0 %v216_v9, %s581_s27  ;;  %227 = vrot.lane.b32.xlu1 %v217_v10, %s581_s27 }
  0x42   : > { %229 = vrot.lane.b32.xlu2 %v218_v11, %s581_s27  ;;  %s496_s27 = scalar_lea.hbm %s495_s16, 32 }
  0x43   : > { %p497_p13 = scmp.ne.s32.totalorder %s495_s16, %s496_s27 }
  0x45   : > { %p498_p0 = pnand %p497_p13, %p654_p3 }
  0x47   : > { %p499_p1 = pneg %p498_p0 }
  0x49   : > { %252 = vrot.lane.b32.xlu0 %v244_v12, %s582_s29  ;;  %254 = vrot.lane.b32.xlu1 %v245_v13, %s582_s29 }
  0x4a   : > { %256 = vrot.lane.b32.xlu2 %v246_v14, %s582_s29 }
  0x51   : > { %258 = vrot.lane.b32.xlu0 %v247_v15, %s582_s29  ;;  %s500_s29 = scalar_lea.hbm %s787_s2, 192 }
  0x52   : > { %p502_p4 = scmp.lt.s32.totalorder %s500_s29, %s496_s27 }
  0x54   : > { %p503_p5 = por %p502_p4, %p501_p2 }
  0x56   : > { %p504_p6 = pnand %p503_p5, %p499_p1 }
  0x84   : > { %v195_v20 = vpop.permute.xlu2 %194 }
  0x8c   : > { %v197_v21 = vpop.permute.xlu2 %196 }
  0x94   : > { %v224_v24 = vpop.permute.xlu2 %223 }
  0x9b   : > { %v166_v22 = vpop.permute.xlu0 %165  ;;  %v170_v23 = vpop.permute.xlu1 %169 }
  0x9c   : > { %178 = vst.msk [vmem:[%s705_s7] sm:$0xff] %vm177_vm1, %v166_v22  ;;  %v230_v27 = vpop.permute.xlu2 %229 }
  0x9d   : > { %207 = vst.msk [vmem:[%s705_s7] sm:$0xff] %vm206_vm2, %v195_v20 }
  0x9e   : > { %180 = vst.msk [vmem:[%s705_s7 + $0x10] sm:$0xff] %vm177_vm1, %v170_v23 }
  0x9f   : > { %236 = vst.msk [vmem:[%s705_s7] sm:$0xff] %vm235_vm3, %v224_v24 }
  0xa3   : > { %v168_v25 = vpop.permute.xlu0 %167  ;;  %v172_v26 = vpop.permute.xlu1 %171 }
  0xa4   : > { %179 = vst.msk [vmem:[%s705_s7 + $0x8] sm:$0xff] %vm177_vm1, %v168_v25  ;;  %v257_v30 = vpop.permute.xlu2 %256 }
  0xa5   : > { %208 = vst.msk [vmem:[%s705_s7 + $0x8] sm:$0xff] %vm206_vm2, %v197_v21 }
  0xa6   : > { %181 = vst.msk [vmem:[%s705_s7 + $0x18] sm:$0xff] %vm177_vm1, %v172_v26 }
  0xab   : > { %v199_v28 = vpop.permute.xlu0 %198  ;;  %v201_v29 = vpop.permute.xlu1 %200 }
  0xac   : > { %209 = vst.msk [vmem:[%s705_s7 + $0x10] sm:$0xff] %vm206_vm2, %v199_v28 }
  0xad   : > { %210 = vst.msk [vmem:[%s705_s7 + $0x18] sm:$0xff] %vm206_vm2, %v201_v29 }
  0xae   : > { %239 = vst.msk [vmem:[%s705_s7 + $0x18] sm:$0xff] %vm235_vm3, %v230_v27 }
  0xb3   : > { %v226_v31 = vpop.permute.xlu0 %225  ;;  %v228_v32 = vpop.permute.xlu1 %227 }
  0xb4   : > { %237 = vst.msk [vmem:[%s705_s7 + $0x8] sm:$0xff] %vm235_vm3, %v226_v31 }
  0xb5   : > { %238 = vst.msk [vmem:[%s705_s7 + $0x10] sm:$0xff] %vm235_vm3, %v228_v32 }
  0xb6   : > { %267 = vst.msk [vmem:[%s705_s7 + $0x10] sm:$0xff] %vm264_vm4, %v257_v30 }
  0xbb   : > { %v253_v33 = vpop.permute.xlu0 %252  ;;  %v255_v34 = vpop.permute.xlu1 %254 }
  0xbc   : > { %265 = vst.msk [vmem:[%s705_s7] sm:$0xff] %vm264_vm4, %v253_v33 }
  0xbd   : > { %266 = vst.msk [vmem:[%s705_s7 + $0x8] sm:$0xff] %vm264_vm4, %v255_v34 }
  0xc3   : > { %v259_v35 = vpop.permute.xlu0 %258 }
  0xc4   : > { %268 = vst.msk [vmem:[%s705_s7 + $0x18] sm:$0xff] %vm264_vm4, %v259_v35 }
  0xc5   : > { %507 = shalt.err (!%p504_p6)
}
  0xc6   : > { %s583_s4 = smov 128   ;;  %s584_s7 = smov 384  }
  0xc7   : > { %390 = dma.vmem_to_hbm [thread:$0]  (%p654_p3), %s284_s12, 512, %s286_s20, %s270_s24, %s583_s4, %s584_s7, %s579_s3  }
  0xc8 PF: > { %p396_p7 = scmp.ge.s32.totalorder %s576_s19, 2  ;;  %s300_s8 = sand.u32 1, %s548_s13  }
  0xc9   : > { %s301_s10 = scalar_lea.sflag [#allocation5], %s300_s8 }
  0xca   : > { %p393_p9 = pnand %p396_p7, %p663_p8 }
  0xcc   : > { %p394_p10 = pneg %p393_p9 }
  0xce   : > { %543 = dma.done.wait (%p394_p10), %s301_s10, 512  }
  0xcf   : > { %545 = vsyncadd (%p394_p10), %s301_s10, 4294966784  ;;  %s23_s19 = sadd.s32 1, %s576_s19   ;;  %s790_s13 = smov %s552_s14 }
  0xd0   : > { %p20_p11 = scmp.ge.s32.totalorder %s23_s19, 8   ;;  %s791_s14 = smov %s556_s15 }
  0xd1   : > { %s792_s15 = smov %s672_s30  ;;  %s793_s16 = smov %s568_s18 }
  0xd2   : > { %s794_s17 = smov %s572_s0  ;;  %s795_s18 = smov %s798_s22 }
  0xd3   : > { %s796_s0 = smov %s802_s23  ;;  %22 = sbr.rel (!%p20_p11) target bundleno = 11 (0xb), region = 64 }
  0xd8   :  { %307 = vsyncpa [#allocation5], 1 }
  0xd9   :  { %309 = vsyncpa [#allocation5 + $0x1], 1 }

</bundles_post_ra>
